<compile_context>
chip_gen: v7x
topology: tpu7x:2x2x1
jax: 0.10.0
libtpu: 0.0.40
codegen_flags: <defaults>
</compile_context>

<pallas_src>
import functools

import jax
import jax.numpy as jnp
import numpy as np
from jax.experimental import pallas as pl
from jax.experimental.pallas import tpu as pltpu


def _encoder_kernel(hidden_size,
                    x_ref, w1_ref, b1_ref, w2_ref, b2_ref, cos_ref, sin_ref,
                    o_ref):
    # Patch projection: conv2d with kernel==stride is a per-patch linear map.
    h = jnp.dot(x_ref[...], w1_ref[...], preferred_element_type=jnp.float32)
    h = h + b1_ref[...]
    h = jnp.maximum(h, 0.0)                                   # ReLU
    # Second linear layer.
    y = jnp.dot(h, w2_ref[...], preferred_element_type=jnp.float32)
    y = y + b2_ref[...]
    # RoPE:  x*cos + rotate_half(x)*sin  ==  x*cos + roll(x, H/2) * sin_signed
    # (sign of the first half is pre-folded into sin_signed; roll uses the XLU).
    rot = pltpu.roll(y, shift=hidden_size // 2, axis=1)
    o_ref[...] = y * cos_ref[...] + rot * sin_ref[...]


def docformer_v2_vl_encoder(x, image_grid_hw, params, *, patch_size, in_channels,
                            hidden_size, max_position_embeddings, rope_theta,
                            row_tile=16):
    """x: (B, grid_h*grid_w, in_channels*patch_size*patch_size) float32."""
    B = x.shape[0]
    # grid shape is read host-side (shapes must be static), matching the module's
    # use of image_grid_hw[0] only.
    grid_h = int(image_grid_hw[0][0])
    grid_w = int(image_grid_hw[0][1])
    S_full = grid_h * grid_w
    S = min(S_full, max_position_embeddings)
    K = in_channels * patch_size * patch_size
    H = hidden_size

    # ---- host-side layout plumbing (no compute) ----
    x_flat = x.reshape(B, S_full, K)[:, :S, :].reshape(B * S, K).astype(jnp.float32)
    w1 = params["conv_w"].reshape(H, K).T.astype(jnp.float32)       # (K, H)
    b1 = params["conv_b"].reshape(1, H).astype(jnp.float32)
    w2 = params["lin_w"].T.astype(jnp.float32)                      # (H, H)
    b2 = params["lin_b"].reshape(1, H).astype(jnp.float32)

    # Hoisted rotary tables (attn_scaling == 1.0 for default rope).
    inv_freq = 1.0 / (rope_theta ** (jnp.arange(0, H, 2, dtype=jnp.float32) / H))
    pos = jnp.arange(S, dtype=jnp.float32)
    freqs = pos[:, None] * inv_freq[None, :]                        # (S, H/2)
    cosf = jnp.cos(freqs)
    sinf = jnp.sin(freqs)
    cos = jnp.concatenate([cosf, cosf], axis=-1)                    # (S, H)
    sin_signed = jnp.concatenate([-sinf, sinf], axis=-1)            # sign folded in
    cos_rows = jnp.tile(cos, (B, 1))                                # (B*S, H)
    sin_rows = jnp.tile(sin_signed, (B, 1))

    # ---- row tiling (flattened batch*seq), multiple of 8 sublanes ----
    rows = B * S
    if rows >= 8:
        row_tile = max(8, (min(row_tile, rows) // 8) * 8)
    else:
        row_tile = rows
    n_tiles = -(-rows // row_tile)
    rows_p = n_tiles * row_tile
    if rows_p != rows:
        pad = rows_p - rows
        x_flat = jnp.pad(x_flat, ((0, pad), (0, 0)))
        cos_rows = jnp.pad(cos_rows, ((0, pad), (0, 0)))
        sin_rows = jnp.pad(sin_rows, ((0, pad), (0, 0)))

    row_spec_in = pl.BlockSpec((row_tile, K), lambda i: (i, 0))
    row_spec_h = pl.BlockSpec((row_tile, H), lambda i: (i, 0))
    const2 = lambda i: (0, 0)

    out = pl.pallas_call(
        functools.partial(_encoder_kernel, H),
        out_shape=jax.ShapeDtypeStruct((rows_p, H), jnp.float32),
        grid=(n_tiles,),
        in_specs=[
            row_spec_in,                               # x
            pl.BlockSpec((K, H), const2),              # w1
            pl.BlockSpec((1, H), const2),              # b1
            pl.BlockSpec((H, H), const2),              # w2
            pl.BlockSpec((1, H), const2),              # b2
            row_spec_h,                                # cos
            row_spec_h,                                # sin (signed)
        ],
        out_specs=row_spec_h,
        compiler_params=pltpu.CompilerParams(dimension_semantics=("parallel",)),
    )(x_flat, w1, b1, w2, b2, cos_rows, sin_rows)

    return out[:rows].reshape(B, S, H)


def reference(x, image_grid_hw, params, *, patch_size, in_channels, hidden_size,
              max_position_embeddings, rope_theta):
    """Plain-JAX reference mirroring the PyTorch forward exactly."""
    B = x.shape[0]
    grid_h = int(image_grid_hw[0][0])
    grid_w = int(image_grid_hw[0][1])
    S_full = grid_h * grid_w
    K = in_channels * patch_size * patch_size
    H = hidden_size

    h = x.reshape(B * S_full, K) @ params["conv_w"].reshape(H, K).T + params["conv_b"]
    h = h.reshape(B, S_full, H)[:, :min(S_full, max_position_embeddings), :]
    h = jnp.maximum(h, 0.0)
    h = h @ params["lin_w"].T + params["lin_b"]

    S = h.shape[1]
    inv_freq = 1.0 / (rope_theta ** (jnp.arange(0, H, 2, dtype=jnp.float32) / H))
    posf = jnp.arange(S, dtype=jnp.float32)
    freqs = posf[:, None] * inv_freq[None, :]
    emb = jnp.concatenate([freqs, freqs], axis=-1)
    cos = jnp.cos(emb)[None]
    sin = jnp.sin(emb)[None]
    x1, x2 = h[..., :H // 2], h[..., H // 2:]
    rot = jnp.concatenate([-x2, x1], axis=-1)
    return h * cos + rot * sin


if __name__ == "__main__":
    # Small config consistent with the module: hidden_size lane-aligned to 128.
    patch_size = 4
    in_channels = 4
    hidden_size = 128
    max_position_embeddings = 512
    rope_theta = 10000.0
    B = 2
    grid_h, grid_w = 4, 4
    S = grid_h * grid_w                                   # 16 patches per image
    K = in_channels * patch_size * patch_size             # 64

    key = jax.random.PRNGKey(0)
    k_x, k_cw, k_cb, k_lw, k_lb = jax.random.split(key, 5)
    x = jax.random.normal(k_x, (B, S, K), dtype=jnp.float32)
    image_grid_hw = np.array([[grid_h, grid_w]] * B, dtype=np.int32)
    params = {
        "conv_w": 0.1 * jax.random.normal(
            k_cw, (hidden_size, in_channels, patch_size, patch_size), jnp.float32),
        "conv_b": 0.1 * jax.random.normal(k_cb, (hidden_size,), jnp.float32),
        "lin_w": 0.1 * jax.random.normal(k_lw, (hidden_size, hidden_size), jnp.float32),
        "lin_b": 0.1 * jax.random.normal(k_lb, (hidden_size,), jnp.float32),
    }

    out = docformer_v2_vl_encoder(
        x, image_grid_hw, params, patch_size=patch_size, in_channels=in_channels,
        hidden_size=hidden_size, max_position_embeddings=max_position_embeddings,
        rope_theta=rope_theta)
    jax.block_until_ready(out)

    ref = reference(
        x, image_grid_hw, params, patch_size=patch_size, in_channels=in_channels,
        hidden_size=hidden_size, max_position_embeddings=max_position_embeddings,
        rope_theta=rope_theta)
    np.testing.assert_allclose(np.asarray(out), np.asarray(ref), rtol=1e-4, atol=1e-4)

    print("KERNEL_OK")
</pallas_src>

<mosaic_0001>
module attributes {stable_mosaic.version = 11 : i64} {
  func.func @_encoder_kernel(%arg0: i32, %arg1: memref<16x64xf32, #tpu.memory_space<vmem>>, %arg2: memref<64x128xf32, #tpu.memory_space<vmem>>, %arg3: memref<1x128xf32, #tpu.memory_space<vmem>>, %arg4: memref<128x128xf32, #tpu.memory_space<vmem>>, %arg5: memref<1x128xf32, #tpu.memory_space<vmem>>, %arg6: memref<16x128xf32, #tpu.memory_space<vmem>>, %arg7: memref<16x128xf32, #tpu.memory_space<vmem>>, %arg8: memref<16x128xf32, #tpu.memory_space<vmem>>) attributes {dimension_semantics = [#tpu.dimension_semantics<parallel>], iteration_bounds = array<i64: 2>, scalar_prefetch = 0 : i64, scratch_operands = 0 : i64, tpu.core_type = #tpu.core_type<tc>, window_params = [{transform_indices = @transform_0, window_bounds = array<i64: 16, 64>}, {pipeline_mode = #tpu.pipeline_mode<synchronous>, transform_indices = @transform_1, window_bounds = array<i64: 64, 128>}, {pipeline_mode = #tpu.pipeline_mode<synchronous>, transform_indices = @transform_2, window_bounds = array<i64: 1, 128>}, {pipeline_mode = #tpu.pipeline_mode<synchronous>, transform_indices = @transform_3, window_bounds = array<i64: 128, 128>}, {pipeline_mode = #tpu.pipeline_mode<synchronous>, transform_indices = @transform_4, window_bounds = array<i64: 1, 128>}, {transform_indices = @transform_5, window_bounds = array<i64: 16, 128>}, {transform_indices = @transform_6, window_bounds = array<i64: 16, 128>}, {transform_indices = @transform_7, window_bounds = array<i64: 16, 128>}]} {
    %c0 = arith.constant 0 : index
    %c0_0 = arith.constant 0 : index
    %0 = vector.load %arg1[%c0, %c0_0] : memref<16x64xf32, #tpu.memory_space<vmem>>, vector<16x64xf32>
    %c0_1 = arith.constant 0 : index
    %c0_2 = arith.constant 0 : index
    %1 = vector.load %arg2[%c0_1, %c0_2] : memref<64x128xf32, #tpu.memory_space<vmem>>, vector<64x128xf32>
    %cst = arith.constant dense<0.000000e+00> : vector<16x128xf32>
    %2 = tpu.matmul %0, %1, %cst {dimension_numbers = #tpu.dot_dimension_numbers<[1], [0], [0], [1], [0, 0, 1, 1], [], []>} : vector<16x64xf32>, vector<64x128xf32>, vector<16x128xf32> -> vector<16x128xf32>
    %c0_3 = arith.constant 0 : index
    %c0_4 = arith.constant 0 : index
    %3 = vector.load %arg3[%c0_3, %c0_4] : memref<1x128xf32, #tpu.memory_space<vmem>>, vector<1x128xf32>
    %4 = vector.broadcast %3 : vector<1x128xf32> to vector<16x128xf32>
    %5 = arith.addf %2, %4 : vector<16x128xf32>
    %cst_5 = arith.constant 0.000000e+00 : f32
    %6 = vector.broadcast %cst_5 : f32 to vector<16x128xf32>
    %7 = arith.maximumf %5, %6 : vector<16x128xf32>
    %c0_6 = arith.constant 0 : index
    %c0_7 = arith.constant 0 : index
    %8 = vector.load %arg4[%c0_6, %c0_7] : memref<128x128xf32, #tpu.memory_space<vmem>>, vector<128x128xf32>
    %cst_8 = arith.constant dense<0.000000e+00> : vector<16x128xf32>
    %9 = tpu.matmul %7, %8, %cst_8 {dimension_numbers = #tpu.dot_dimension_numbers<[1], [0], [0], [1], [0, 0, 1, 1], [], []>} : vector<16x128xf32>, vector<128x128xf32>, vector<16x128xf32> -> vector<16x128xf32>
    %c0_9 = arith.constant 0 : index
    %c0_10 = arith.constant 0 : index
    %10 = vector.load %arg5[%c0_9, %c0_10] : memref<1x128xf32, #tpu.memory_space<vmem>>, vector<1x128xf32>
    %11 = vector.broadcast %10 : vector<1x128xf32> to vector<16x128xf32>
    %12 = arith.addf %9, %11 : vector<16x128xf32>
    %c64_i32 = arith.constant 64 : i32
    %13 = tpu.dynamic_rotate %12 by %c64_i32 dim 1 : vector<16x128xf32>, i32 -> vector<16x128xf32>
    %c0_11 = arith.constant 0 : index
    %c0_12 = arith.constant 0 : index
    %14 = vector.load %arg6[%c0_11, %c0_12] : memref<16x128xf32, #tpu.memory_space<vmem>>, vector<16x128xf32>
    %15 = arith.mulf %12, %14 : vector<16x128xf32>
    %c0_13 = arith.constant 0 : index
    %c0_14 = arith.constant 0 : index
    %16 = vector.load %arg7[%c0_13, %c0_14] : memref<16x128xf32, #tpu.memory_space<vmem>>, vector<16x128xf32>
    %17 = arith.mulf %13, %16 : vector<16x128xf32>
    %18 = arith.addf %15, %17 : vector<16x128xf32>
    %c0_15 = arith.constant 0 : index
    %c0_16 = arith.constant 0 : index
    %19 = vector.load %arg8[%c0_15, %c0_16] : memref<16x128xf32, #tpu.memory_space<vmem>>, vector<16x128xf32>
    tpu.vector_store %arg8[%c0_15, %c0_16], %18 {strides = array<i32>} : memref<16x128xf32, #tpu.memory_space<vmem>>, vector<16x128xf32>,
    return
  }
  func.func @transform_0(%arg0: i32) -> (i32, i32) {
    %c0_i32 = arith.constant 0 : i32
    %c0_i32_0 = arith.constant 0 : i32
    return %arg0, %c0_i32 : i32, i32
  }
  func.func @transform_1(%arg0: i32) -> (i32, i32) {
    %c0_i32 = arith.constant 0 : i32
    %c0_i32_0 = arith.constant 0 : i32
    %c0_i32_1 = arith.constant 0 : i32
    return %c0_i32, %c0_i32_0 : i32, i32
  }
  func.func @transform_2(%arg0: i32) -> (i32, i32) {
    %c0_i32 = arith.constant 0 : i32
    %c0_i32_0 = arith.constant 0 : i32
    %c0_i32_1 = arith.constant 0 : i32
    return %c0_i32, %c0_i32_0 : i32, i32
  }
  func.func @transform_3(%arg0: i32) -> (i32, i32) {
    %c0_i32 = arith.constant 0 : i32
    %c0_i32_0 = arith.constant 0 : i32
    %c0_i32_1 = arith.constant 0 : i32
    return %c0_i32, %c0_i32_0 : i32, i32
  }
  func.func @transform_4(%arg0: i32) -> (i32, i32) {
    %c0_i32 = arith.constant 0 : i32
    %c0_i32_0 = arith.constant 0 : i32
    %c0_i32_1 = arith.constant 0 : i32
    return %c0_i32, %c0_i32_0 : i32, i32
  }
  func.func @transform_5(%arg0: i32) -> (i32, i32) {
    %c0_i32 = arith.constant 0 : i32
    %c0_i32_0 = arith.constant 0 : i32
    return %arg0, %c0_i32 : i32, i32
  }
  func.func @transform_6(%arg0: i32) -> (i32, i32) {
    %c0_i32 = arith.constant 0 : i32
    %c0_i32_0 = arith.constant 0 : i32
    return %arg0, %c0_i32 : i32, i32
  }
  func.func @transform_7(%arg0: i32) -> (i32, i32) {
    %c0_i32 = arith.constant 0 : i32
    %c0_i32_0 = arith.constant 0 : i32
    return %arg0, %c0_i32 : i32, i32
  }
}

</mosaic_0001>

<bundles_post_ra>
// kernel: tpu_custom_call.1
= control target key start
LH: loop header
LB: loop body
LE: loop exit
PB: predicated region body
PF: predicated region fallthrough
CT: control target
= control target key end

     0   :  { %s1635_s0 = inlined_call_operand.hbm [shape: f32[32,64], index: 0, kind: input, shape index: {}]   ;;  %s1636_s1 = inlined_call_operand.hbm [shape: f32[64,128], index: 1, kind: input, shape index: {}]   ;;  %s1637_s2 = inlined_call_operand.vmem [shape: f32[1,128], index: 2, kind: input, shape index: {}]   ;;  %s1638_s3 = inlined_call_operand.hbm [shape: f32[128,128], index: 3, kind: input, shape index: {}]   ;;  %s1639_s4 = inlined_call_operand.vmem [shape: f32[1,128], index: 4, kind: input, shape index: {}]   ;;  %s1640_s5 = inlined_call_operand.hbm [shape: f32[32,128], index: 5, kind: input, shape index: {}]   ;;  %s1641_s6 = inlined_call_operand.hbm [shape: f32[32,128], index: 6, kind: input, shape index: {}]   ;;  %s1642_s7 = inlined_call_operand.hbm [shape: f32[32,128], index: 7, kind: output, shape index: {}]  }
   0x1   :  { %1664 = sst [smem:[#allocation21_spill]] %s1636_s1 }
   0x2   :  { %1665 = sst [smem:[#allocation22_spill]] %s1640_s5 }
   0x3   :  { %12 = vsyncpa [#allocation3], 0 }
   0x4   :  { %14 = vsyncpa [#allocation3 + $0x1], 0 }
   0x5   :  { %15 = vsyncpa [#allocation6], 0 }
   0x6   :  { %16 = vsyncpa [#allocation9], 0 }
   0x7   :  { %18 = vsyncpa [#allocation9 + $0x1], 0 }
   0x8   :  { %19 = vsyncpa [#allocation4], 0 }
   0x9   :  { %21 = vsyncpa [#allocation4 + $0x1], 0  ;;  %s1290_s24 = smov 0   ;;  %s1292_s25 = smov 0  }
   0xa   :  { %s1294_s26 = smov 0   ;;  %s1296_s27 = smov 0  }
   0xb LB: > { %1666 = sst [smem:[#allocation16_spill]] %s1225_s24  ;;  %s1311_s28 = sadd.s32 4294967295, %s1237_s27   ;;  %s1237_s27 = sphi %s1296_s27, %s1701_s27   ;;  %s1233_s26 = sphi %s1294_s26, %s1705_s26   ;;  %s1229_s25 = sphi %s1292_s25, %s1704_s25   ;;  %s1225_s24 = sphi %s1290_s24, %s1703_s24  }
   0xc   : > { %1667 = sst [smem:[#allocation17_spill]] %s1237_s27  ;;  %s771_s29 = sadd.s32 4294967294, %s1237_s27  }
   0xd   : > { %s1315_s30 = sadd.s32 1, %s1237_s27   ;;  %s34_s8 = sadd.s32 1, %s1233_s26 }
   0xe   : > { %1668 = sst [smem:[#allocation18_spill]] %s1315_s30  ;;  %s31_s9 = ssub.s32 %s1237_s27, %s1315_s30 }
   0xf   : > { %p41_p0 = scmp.ne.s32.totalorder %s1233_s26, %s1229_s25  ;;  %p32_p1 = scmp.eq.s32.totalorder %s31_s9, 0 }
  0x10   : > { %p42_p2 = scmp.eq.s32.totalorder %s1237_s27, 0  ;;  %p47_p3 = scmp.ne.s32.totalorder %s1229_s25, %s1225_s24 }
  0x11   : > { %p1644_p4 = scmp.eq.s32.totalorder %s1311_s28, 0  ;;  %p207_p7 = scmp.eq.s32.totalorder %s1311_s28, 1 }
  0x12   : > { %s1327_s10 = scalar_select %p32_p1, %s1233_s26, %s34_s8  }
  0x13   : > { %p1329_p5 = por %p42_p2, %p41_p0  ;;  %p1335_p6 = por %p1644_p4, %p47_p3 }
  0x14   : > { %1669 = sst [smem:[#allocation19_spill]] %s1327_s10  ;;  %p213_p8 = scmp.eq.s32.totalorder %s771_s29, 1 }
  0x15   : > { %s1670_s11 = scalar_select %p1329_p5, 1, 0 }
  0x16   : > { %s1671_s12 = scalar_select %p1335_p6, 1, 0 }
  0x17   : > { %p772_p9 = scmp.ge.s32.totalorder %s1237_s27, 1  ;;  %p220_p10 = scmp.lt.s32.totalorder %s1237_s27, 3 }
  0x18   : > { %p1342_p11 = por %p207_p7, %p41_p0  ;;  %p1346_p12 = por %p213_p8, %p47_p3 }
  0x19   : > { %p1350_p13 = pnand %p772_p9, %p220_p10  ;;  %s1239_s16 = smov [#allocation5]  }
  0x1a   : > { %s1672_s13 = scalar_select %p1342_p11, 1, 0 }
  0x1b   : > { %s1673_s14 = scalar_select %p1346_p12, 1, 0 }
  0x1c   : > { %s1675_s15 = scalar_select %p1350_p13, 1, 0 }
  0x1d   : > { %1674 = sst [smem:[#allocation20_spill]] %s1673_s14  ;;  %p951_p1 = pneg %p1350_p13 }
  0x1e   : > { %s232_s17 = sshll.u32 %s1239_s16, 4  ;;  %s1643_s19 = sand.u32 1, %s1233_s26   ;;  %s233_s17 = int_to_ptr.vmem [resolvable:$true] %s232_s17 }
  0x1f   : > { %p1358_p2 = pnand %p951_p1, %p1644_p4  ;;  %s1367_s20 = sshll.u32 %s1643_s19, 4 }
  0x20   : > { %s1677_s1 = sld [smem:[#allocation21_spill]] }
  0x21   : > { %s1676_s18 = scalar_select %p1358_p2, 1, 0 }
  0x22   : > { %p1654_p8 = pneg %p1358_p2 }
  0x26   : > { %s1017_s23 = scalar_lea.hbm %s1677_s1, 1024 }
  0x27   : > { %p1018_p7 = scmp.ne.s32.totalorder %s1677_s1, %s1017_s23  ;;  %p1024_p1 = scmp.lt.u32.totalorder %s1017_s23, %s1677_s1 }
  0x29   : > { %p1020_p9 = pnand %p1654_p8, %p1018_p7 }
  0x2b   : > { %p1021_p10 = pneg %p1020_p9 }
  0x2d   : > { %p1026_p0 = pnand %p1024_p1, %p1021_p10 }
  0x2f   : > { %1029 = shalt.err (!%p1026_p0)
}
  0x30   : > { %s1030_s19 = scalar_lea.vmem %s233_s17, 1024  ;;  %p1038_p11 = scmp.lt.s32.totalorder %s233_s17, %s233_s17 }
  0x31   : > { %p1031_p4 = scmp.ne.s32.totalorder %s233_s17, %s1030_s19  ;;  %p1039_p6 = scmp.lt.s32.totalorder %s1030_s19, %s1030_s19 }
  0x33   : > { %p1033_p3 = pnand %p1031_p4, %p1654_p8  ;;  %p1040_p13 = por %p1039_p6, %p1038_p11 }
  0x35   : > { %p1034_p12 = pneg %p1033_p3 }
  0x37   : > { %p1041_p5 = pnand %p1040_p13, %p1034_p12 }
  0x39   : > { %1044 = shalt.err (!%p1041_p5)
}
  0x3a   : > { %s1650_s21 = smov 128   ;;  %s1652_s22 = smov 8  }
  0x3b   : > { %954 = dma.hbm_to_vmem [thread:$0]  (!%p1358_p2), %s1677_s1, 1024, %s233_s17, [#allocation6], %s1650_s21, %s1650_s21, %s1652_s22  }
  0x3c   : > { %s1395_s19 = sshll.u32 %s1237_s27, 8  ;;  %p1678_p4 = scmp.ne.s32.totalorder %s1670_s11, 0 }
  0x3d   : > { %p1679_p5 = scmp.lt.s32.totalorder %s1237_s27, 2  ;;  %s286_s9 = sand.u32 1, %s1237_s27  }
  0x3e   : > { %s1681_s5 = sld [smem:[#allocation22_spill]]  ;;  %s290_s17 = scalar_lea.vmem [#allocation8], %s1367_s20 }
  0x3f   : > { %p1401_p6 = pnand %p1679_p5, %p1678_p4  ;;  %s297_s23 = sshll.u32 %s290_s17, 4  ;;  %s1413_s23 = int_to_ptr.vmem [resolvable:$true] %s297_s23 }
  0x40   : > { %s1415_s11 = scalar_lea.sflag [#allocation9], %s286_s9 }
  0x41   : > { %s1680_s8 = scalar_select %p1401_p6, 1, 0 }
  0x42   : > { %p1421_p12 = pneg %p1401_p6 }
  0x44   : > { %s1410_s30 = scalar_lea.hbm %s1681_s5, %s1395_s19  ;;  %s1050_s22 = scalar_lea.hbm %s1681_s5, 512 }
  0x45   : > { %s1045_s29 = scalar_lea.hbm %s1410_s30, 256  ;;  %p1051_p3 = scmp.lt.u32.totalorder %s1410_s30, %s1681_s5 }
  0x46   : > { %p1046_p11 = scmp.ne.s32.totalorder %s1410_s30, %s1045_s29  ;;  %p1052_p7 = scmp.lt.u32.totalorder %s1050_s22, %s1045_s29 }
  0x47   : > { %s1682_s21 = scalar_select %p1421_p12, 1, 0 }
  0x48   : > { %p1048_p13 = pnand %p1421_p12, %p1046_p11  ;;  %p1053_p9 = por %p1052_p7, %p1051_p3 }
  0x49   : > { %p1054_p10 = scmp.lt.u32.totalorder %s1045_s29, %s1410_s30 }
  0x4a   : > { %p1049_p0 = pneg %p1048_p13 }
  0x4b   : > { %p1055_p1 = por %p1054_p10, %p1053_p9 }
  0x4d   : > { %p1056_p4 = pnand %p1055_p1, %p1049_p0 }
  0x4f   : > { %1059 = shalt.err (!%p1056_p4)
}
  0x50   : > { %s1060_s9 = scalar_lea.vmem %s1413_s23, 256  ;;  %s1242_s10 = smov [#allocation8]  }
  0x51   : > { %p1061_p5 = scmp.ne.s32.totalorder %s1413_s23, %s1060_s9  ;;  %s1065_s16 = sshll.u32 %s1242_s10, 4  ;;  %s1066_s16 = int_to_ptr.vmem [resolvable:$false] %s1065_s16 }
  0x52   : > { %s1067_s1 = scalar_lea.vmem %s1066_s16, 512  ;;  %p1068_p8 = scmp.lt.s32.totalorder %s1413_s23, %s1066_s16 }
  0x53   : > { %p1063_p11 = pnand %p1061_p5, %p1421_p12  ;;  %p1069_p2 = scmp.lt.s32.totalorder %s1067_s1, %s1060_s9 }
  0x55   : > { %p1064_p13 = pneg %p1063_p11  ;;  %p1070_p3 = por %p1069_p2, %p1068_p8 }
  0x57   : > { %p1071_p7 = pnand %p1070_p3, %p1064_p13 }
  0x59   : > { %1074 = shalt.err (!%p1071_p7)
}
  0x5a   : > { %s1683_s22 = smov 8   ;;  %s1684_s29 = smov 128  }
  0x5b   : > { %964 = dma.hbm_to_vmem [thread:$0]  (!%p1401_p6), %s1410_s30, 256, %s1413_s23, %s1415_s11, %s1684_s29, %s1684_s29, %s1683_s22  }
  0x5c   : > { %s1243_s17 = smov [#allocation7]   ;;  %s1075_s9 = scalar_lea.hbm %s1638_s3, 2048 }
  0x5d   : > { %s248_s5 = sshll.u32 %s1243_s17, 4  ;;  %p1076_p2 = scmp.ne.s32.totalorder %s1638_s3, %s1075_s9  ;;  %s249_s5 = int_to_ptr.vmem [resolvable:$true] %s248_s5 }
  0x5e   : > { %p1685_p8 = scmp.ne.s32.totalorder %s1676_s18, 0  ;;  %p1082_p1 = scmp.lt.u32.totalorder %s1075_s9, %s1638_s3 }
  0x60   : > { %p1686_p0 = pneg %p1685_p8 }
  0x62   : > { %p1078_p9 = pnand %p1076_p2, %p1686_p0 }
  0x64   : > { %p1079_p10 = pneg %p1078_p9 }
  0x66   : > { %p1084_p4 = pnand %p1082_p1, %p1079_p10 }
  0x68   : > { %1087 = shalt.err (!%p1084_p4)
}
  0x69   : > { %s1088_s30 = scalar_lea.vmem %s249_s5, 2048  ;;  %p1687_p11 = pmov %p1686_p0 }
  0x6a   : > { %p1089_p5 = scmp.ne.s32.totalorder %s249_s5, %s1088_s30  ;;  %p1096_p7 = scmp.lt.s32.totalorder %s249_s5, %s249_s5 }
  0x6b   : > { %p1097_p6 = scmp.lt.s32.totalorder %s1088_s30, %s1088_s30 }
  0x6c   : > { %p1091_p13 = pnand %p1089_p5, %p1687_p11 }
  0x6d   : > { %p1098_p12 = por %p1097_p6, %p1096_p7 }
  0x6e   : > { %p1092_p3 = pneg %p1091_p13 }
  0x70   : > { %p1099_p0 = pnand %p1098_p12, %p1092_p3 }
  0x72   : > { %1102 = shalt.err (!%p1099_p0)
}
  0x73   : > { %957 = dma.hbm_to_vmem [thread:$0]  (!%p1685_p8), %s1638_s3, 2048, %s249_s5, [#allocation6], %s1684_s29, %s1684_s29, %s1683_s22  }
  0x74   : > { %s1475_s17 = scalar_lea.hbm %s1635_s0, %s1395_s19  ;;  %s269_s18 = scalar_lea.vmem [#allocation2], %s1367_s20 }
  0x75   : > { %s276_s10 = sshll.u32 %s269_s18, 4  ;;  %s1688_s9 = sand.u32 1, %s1233_s26   ;;  %s1478_s10 = int_to_ptr.vmem [resolvable:$true] %s276_s10 }
  0x76   : > { %s1482_s16 = scalar_lea.sflag [#allocation3], %s1688_s9  ;;  %s1103_s1 = scalar_lea.hbm %s1475_s17, 256 }
  0x77   : > { %p1104_p6 = scmp.ne.s32.totalorder %s1475_s17, %s1103_s1  ;;  %p1689_p12 = scmp.ne.s32.totalorder %s1682_s21, 0 }
  0x78   : > { %s1108_s24 = scalar_lea.hbm %s1635_s0, 512  ;;  %p1109_p9 = scmp.lt.u32.totalorder %s1475_s17, %s1635_s0 }
  0x79   : > { %p1106_p2 = pnand %p1104_p6, %p1689_p12  ;;  %p1110_p10 = scmp.lt.u32.totalorder %s1108_s24, %s1103_s1 }
  0x7a   : > { %p1112_p4 = scmp.lt.u32.totalorder %s1103_s1, %s1475_s17 }
  0x7b   : > { %p1107_p8 = pneg %p1106_p2  ;;  %p1111_p1 = por %p1110_p10, %p1109_p9 }
  0x7d   : > { %p1113_p5 = por %p1112_p4, %p1111_p1 }
  0x7f   : > { %p1114_p11 = pnand %p1113_p5, %p1107_p8 }
  0x81   : > { %1117 = shalt.err (!%p1114_p11)
}
  0x82   : > { %s1118_s23 = scalar_lea.vmem %s1478_s10, 256  ;;  %s1244_s18 = smov [#allocation2]  }
  0x83   : > { %p1119_p13 = scmp.ne.s32.totalorder %s1478_s10, %s1118_s23  ;;  %s1123_s9 = sshll.u32 %s1244_s18, 4  ;;  %s1124_s9 = int_to_ptr.vmem [resolvable:$false] %s1123_s9 }
  0x84   : > { %s1125_s5 = scalar_lea.vmem %s1124_s9, 512  ;;  %p1126_p0 = scmp.lt.s32.totalorder %s1478_s10, %s1124_s9 }
  0x85   : > { %p1121_p3 = pnand %p1119_p13, %p1689_p12  ;;  %p1127_p6 = scmp.lt.s32.totalorder %s1125_s5, %s1118_s23 }
  0x87   : > { %p1122_p7 = pneg %p1121_p3  ;;  %p1128_p2 = por %p1127_p6, %p1126_p0 }
  0x89   : > { %p1129_p9 = pnand %p1128_p2, %p1122_p7 }
  0x8b   : > { %1132 = shalt.err (!%p1129_p9)
}
  0x8c   : > { %p1690_p8 = scmp.ne.s32.totalorder %s1680_s8, 0  ;;  %s1513_s24 = scalar_lea.hbm %s1641_s6, %s1395_s19 }
  0x8d   : > { %s311_s27 = scalar_lea.vmem [#allocation10], %s1367_s20  ;;  %s1133_s23 = scalar_lea.hbm %s1513_s24, 256 }
  0x8e   : > { %961 = dma.hbm_to_vmem [thread:$0]  (!%p1690_p8), %s1475_s17, 256, %s1478_s10, %s1482_s16, %s1684_s29, %s1684_s29, %s1683_s22  }
  0x8f   : > { %s318_s14 = sshll.u32 %s311_s27, 4  ;;  %p1134_p10 = scmp.ne.s32.totalorder %s1513_s24, %s1133_s23  ;;  %s1516_s14 = int_to_ptr.vmem [resolvable:$true] %s318_s14 }
  0x90   : > { %s1138_s10 = scalar_lea.hbm %s1641_s6, 512  ;;  %p1139_p5 = scmp.lt.u32.totalorder %s1513_s24, %s1641_s6 }
  0x91   : > { %p1136_p1 = pnand %p1134_p10, %p1689_p12  ;;  %p1140_p11 = scmp.lt.u32.totalorder %s1138_s10, %s1133_s23 }
  0x92   : > { %p1142_p3 = scmp.lt.u32.totalorder %s1133_s23, %s1513_s24 }
  0x93   : > { %p1137_p4 = pneg %p1136_p1  ;;  %p1141_p13 = por %p1140_p11, %p1139_p5 }
  0x95   : > { %p1143_p7 = por %p1142_p3, %p1141_p13 }
  0x97   : > { %p1144_p0 = pnand %p1143_p7, %p1137_p4 }
  0x99   : > { %1147 = shalt.err (!%p1144_p0)
}
  0x9a   : > { %s1148_s20 = scalar_lea.vmem %s1516_s14, 256  ;;  %s1245_s9 = smov [#allocation10]  }
  0x9b   : > { %p1149_p6 = scmp.ne.s32.totalorder %s1516_s14, %s1148_s20  ;;  %s1153_s5 = sshll.u32 %s1245_s9, 4  ;;  %s1154_s5 = int_to_ptr.vmem [resolvable:$false] %s1153_s5 }
  0x9c   : > { %s1155_s1 = scalar_lea.vmem %s1154_s5, 512  ;;  %p1156_p10 = scmp.lt.s32.totalorder %s1516_s14, %s1154_s5 }
  0x9d   : > { %p1151_p2 = pnand %p1149_p6, %p1689_p12  ;;  %p1157_p1 = scmp.lt.s32.totalorder %s1155_s1, %s1148_s20 }
  0x9f   : > { %p1152_p9 = pneg %p1151_p2  ;;  %p1158_p5 = por %p1157_p1, %p1156_p10 }
  0xa1   : > { %p1159_p11 = pnand %p1158_p5, %p1152_p9 }
  0xa3   : > { %1162 = shalt.err (!%p1159_p11)
}
  0xa4   : > { %967 = dma.hbm_to_vmem [thread:$0]  (!%p1690_p8), %s1513_s24, 256, %s1516_s14, %s1415_s11, %s1684_s29, %s1684_s29, %s1683_s22  }
  0xa5   : > { %p1691_p12 = scmp.ne.s32.totalorder %s1675_s15, 0 }
  0xa6   : > { %s1546_s21 = sand.u32 (!%p1691_p12), 1, %s1229_s25   ;;  %p1692_p4 = scmp.ne.s32.totalorder (!%p1691_p12), %s1671_s12, 0 }
  0xa7   : > { %330 = sbr.rel (%p1691_p12) target bundleno = 771 (0x303), region = 48  ;;  %s1549_s30 = sshll.u32 (!%p1691_p12), %s1546_s21, 4 }
  0xa8   : > { %s333_s8 = scalar_lea.sflag (!%p1691_p12), [#allocation3], %s1546_s21  ;;  %s336_s27 = scalar_lea.vmem (!%p1691_p12), [#allocation2], %s1549_s30 }
  0xae   : > { %1208 = dma.done.wait (%p1692_p4), %s333_s8, 256  }
  0xaf   : > { %1210 = vsyncadd (%p1692_p4), %s333_s8, 4294967040  ;;  %p1693_p8 = scmp.eq.s32.totalorder %s1311_s28, 0 }
  0xb1   : > { %1212 = dma.done.wait (%p1693_p8), [#allocation6], 3072   ;;  %p1694_p13 = pmov %p1693_p8 }
  0xb2   : > { %s349_s15 = sand.u32 1, %s1311_s28   ;;  %s353_s22 = scalar_lea.vmem [#allocation8], %s1549_s30 }
  0xb3   : > { %1214 = vsyncadd (%p1694_p13), [#allocation6], 4294964224  ;;  %s350_s11 = scalar_lea.sflag [#allocation9], %s349_s15 }
  0xb4   : > { %1216 = dma.done.wait (%p1692_p4), %s350_s11, 512  }
  0xb5   : > { %1218 = vsyncadd (%p1692_p4), %s350_s11, 4294966784  ;;  %v409_v0 = vld [vmem:[#allocation5] sm:$0xff]  ;;  %v410_v1 = vld [vmem:[#allocation5 + $0x8] sm:$0xff]  ;;  %vm424_vm0 = vcmask 523264   ;;  %s1246_s23 = smov 64   ;;  %s362_s18 = scalar_lea.vmem [#allocation10], %s1549_s30 }
  0xb6   : > { %v411_v2 = vld [vmem:[#allocation5 + $0x10] sm:$0xff]  ;;  %v887_v3 = vpack.c.bf16 %v410_v1, %v409_v0  ;;  %v412_v4 = vld [vmem:[#allocation5 + $0x18] sm:$0xff]  ;;  %v413_v6 = vld [vmem:[#allocation5 + $0x20] sm:$0xff]  ;;  %s402_s17 = scalar_lea.vmem [#allocation11], %s1549_s30  ;;  %s804_s16 = sshll.u32 %s1311_s28, 8 }
  0xb7   : > { %v891_v5 = vpack.c.bf16 %v412_v4, %v411_v2  ;;  %v414_v7 = vld [vmem:[#allocation5 + $0x28] sm:$0xff]  ;;  %v407_v8 = vld [vmem:[%s336_s27] sm:$0xff]  ;;  %v511_v13 = vld [vmem:[#allocation7 + $0x18] sm:$0xff]  ;;  %s636_s10 = sshll.u32 %s402_s17, 4  ;;  %s1591_s9 = scalar_lea.hbm %s1642_s7, %s804_s16  ;;  %s1586_s10 = int_to_ptr.vmem [resolvable:$true] %s636_s10 }
  0xb8   : > { %888 = vmatprep.subr.bf16.mxu0 %v887_v3  ;;  %849 = vmatprep.mubr.msk.f32.mxu0 %vm424_vm0, %v407_v8  ;;  %v508_v9 = vld [vmem:[#allocation7] sm:$0xff]  ;;  %v509_v10 = vld [vmem:[#allocation7 + $0x8] sm:$0xff]  ;;  %v510_v12 = vld [vmem:[#allocation7 + $0x10] sm:$0xff]  ;;  %v895_v14 = vpack.c.bf16 %v414_v7, %v413_v6  ;;  %s623_s5 = scalar_lea.sflag [#allocation4], %s1546_s21  ;;  %s1163_s1 = scalar_lea.vmem %s1586_s10, 256 }
  0xb9   : > { %890 = vmatpush3.bf16.msra.mxu0 %v887_v3  ;;  %v903_v11 = vpack.c.bf16 %v509_v10, %v508_v9  ;;  %v907_v15 = vpack.c.bf16 %v511_v13, %v510_v12  ;;  %v512_v16 = vld [vmem:[#allocation7 + $0x20] sm:$0xff]  ;;  %v513_v17 = vld [vmem:[#allocation7 + $0x28] sm:$0xff]  ;;  %v415_v18 = vld [vmem:[#allocation5 + $0x30] sm:$0xff]  ;;  %p1164_p3 = scmp.ne.s32.totalorder %s1586_s10, %s1163_s1  ;;  %p1695_p7 = scmp.ne.s32.totalorder %s1672_s13, 0 }
  0xba   : > { %892 = vmatprep.subr.bf16.mxu0 %v891_v5  ;;  %v416_v19 = vld [vmem:[#allocation5 + $0x38] sm:$0xff]  ;;  %v911_v20 = vpack.c.bf16 %v513_v17, %v512_v16  ;;  %v514_v22 = vld [vmem:[#allocation7 + $0x30] sm:$0xff]  ;;  %v516_v25 = vld [vmem:[#allocation7 + $0x40] sm:$0xff]  ;;  %s1247_s28 = smov [#allocation11]  }
  0xbb   : > { %904 = vmatprep.subr.bf16.mxu1 %v903_v11  ;;  %v899_v21 = vpack.c.bf16 %v416_v19, %v415_v18  ;;  %v515_v23 = vld [vmem:[#allocation7 + $0x38] sm:$0xff]  ;;  %v517_v26 = vld [vmem:[#allocation7 + $0x48] sm:$0xff]  ;;  %v518_v29 = vld [vmem:[#allocation7 + $0x50] sm:$0xff]  ;;  %p1165_p0 = pnand %p1164_p3, %p1695_p7  ;;  %s1167_s30 = sshll.u32 %s1247_s28, 4  ;;  %s1168_s30 = int_to_ptr.vmem [resolvable:$false] %s1167_s30 }
  0xbc   : > { %906 = vmatpush3.bf16.msra.mxu1 %v903_v11  ;;  %v915_v24 = vpack.c.bf16 %v515_v23, %v514_v22  ;;  %v408_v27 = vld [vmem:[%s336_s27 + $0x8] sm:$0xff]  ;;  %v919_v28 = vpack.c.bf16 %v517_v26, %v516_v25  ;;  %v520_v32 = vld [vmem:[#allocation7 + $0x60] sm:$0xff]  ;;  %v522_v35 = vld [vmem:[#allocation7 + $0x70] sm:$0xff]  ;;  %s1169_s8 = scalar_lea.vmem %s1168_s30, 512  ;;  %p1170_p2 = scmp.lt.s32.totalorder %s1586_s10, %s1168_s30 }
  0xbd   : > { %894 = vmatpush3.bf16.msra.mxu0 %v891_v5  ;;  %908 = vmatprep.subr.bf16.mxu1 %v907_v15  ;;  %v519_v30 = vld [vmem:[#allocation7 + $0x58] sm:$0xff]  ;;  %v521_v33 = vld [vmem:[#allocation7 + $0x68] sm:$0xff]  ;;  %v792_v38 = vld [vmem:[%s1637_s2] ss:$0 sm:$0xff]  ;;  %p1166_p6 = pneg %p1165_p0  ;;  %p1171_p9 = scmp.lt.s32.totalorder %s1169_s8, %s1163_s1 }
  0xbe   : > { %896 = vmatprep.subr.bf16.mxu0 %v895_v14  ;;  %v923_v31 = vpack.c.bf16 %v519_v30, %v518_v29  ;;  %v927_v34 = vpack.c.bf16 %v521_v33, %v520_v32  ;;  %v523_v36 = vld [vmem:[#allocation7 + $0x78] sm:$0xff]  ;;  %v795_v45 = vld [vmem:[%s1639_s4] ss:$0 sm:$0xff] }
  0xbf   : > { %v931_v37 = vpack.c.bf16 %v523_v36, %v522_v35  ;;  %v610_v50 = vld [vmem:[%s353_s22] sm:$0xff]  ;;  %v611_v55 = vld [vmem:[%s353_s22 + $0x8] sm:$0xff]  ;;  %p1172_p10 = por %p1171_p9, %p1170_p2 }
  0xc0   : > { %910 = vmatpush3.bf16.msra.mxu1 %v907_v15  ;;  %v614_v51 = vld [vmem:[%s362_s18] sm:$0xff]  ;;  %v615_v56 = vld [vmem:[%s362_s18 + $0x8] sm:$0xff] }
  0xc1   : > { %898 = vmatpush3.bf16.msra.mxu0 %v895_v14  ;;  %912 = vmatprep.subr.bf16.mxu1 %v911_v20  ;;  %p1173_p1 = pnand %p1172_p10, %p1166_p6 }
  0xc2   : > { %900 = vmatprep.subr.bf16.mxu0 %v899_v21 }
  0xc4   : > { %914 = vmatpush3.bf16.msra.mxu1 %v911_v20 }
  0xc5   : > { %902 = vmatpush3.bf16.msra.mxu0 %v899_v21  ;;  %916 = vmatprep.subr.bf16.mxu1 %v915_v24 }
  0xc8   : > { %850 = vmatmul.mubr.msk.f32.vlgmr.msra.gmra.mrb[0].mxu0 %vm424_vm0, %v408_v27  ;;  %918 = vmatpush3.bf16.msra.mxu1 %v915_v24 }
  0xc9   : > { %920 = vmatprep.subr.bf16.mxu1 %v919_v28 }
  0xcc   : > { %922 = vmatpush3.bf16.msra.mxu1 %v919_v28 }
  0xcd   : > { %924 = vmatprep.subr.bf16.mxu1 %v923_v31 }
  0xd0   : > { %926 = vmatpush3.bf16.msra.mxu1 %v923_v31 }
  0xd1   : > { %928 = vmatprep.subr.bf16.mxu1 %v927_v34 }
  0xd4   : > { %930 = vmatpush3.bf16.msra.mxu1 %v927_v34 }
  0xd5   : > { %932 = vmatprep.subr.bf16.mxu1 %v931_v37 }
  0xd8   : > { %934 = vmatpush3.bf16.msra.mxu1 %v931_v37 }
 0x19b   : > { %v851_v39 = vpop.f32.mrb[0].mxu0 }
 0x19c   : > { %v503_v40 = vadd.f32 %v851_v39, %v792_v38  ;;  %v497_v41 = vpop.f32.mrb[1].mxu0 }
 0x19d   : > { %v498_v42 = vadd.f32 %v792_v38, %v497_v41 }
 0x19e   : > { %v507_v44 = vmax.f32 %v503_v40, 0.0 }
 0x19f   : > { %v506_v43 = vmax.f32 %v498_v42, 0.0 }
 0x1a1   : > { %884 = vmatprep.mubr.f32.mxu1 %v506_v43 }
 0x1a2   : > { %885 = vmatmul.mubr.f32.vlgmr.msra.gmra.mrb[0].mxu1 %v507_v44 }
 0x275   : > { %v886_v46 = vpop.f32.mrb[0].mxu1 }
 0x276   : > { %v597_v47 = vpop.f32.mrb[1].mxu1  ;;  %v603_v49 = vadd.f32 %v886_v46, %v795_v45 }
 0x277   : > { %v598_v48 = vadd.f32 %v795_v45, %v597_v47 }
 0x278   : > { %v613_v59 = vmul.f32 %v611_v55, %v603_v49 }
 0x279   : > { %606 = vrot.lane.b32.xlu0 %v598_v48, %s1246_s23  ;;  %v612_v53 = vmul.f32 %v610_v50, %v598_v48 }
 0x27d   : > { %608 = vrot.lane.b32.xlu0 %v603_v49, %s1246_s23 }
 0x2eb   : > { %v607_v52 = vpop.permute.xlu0 %606 }
 0x2ec   : > { %v616_v54 = vmul.f32 %v614_v51, %v607_v52 }
 0x2ee   : > { %v618_v57 = vadd.f32 %v616_v54, %v612_v53 }
 0x2ef   : > { %v609_v58 = vpop.permute.xlu0 %608 }
 0x2f0   : > { %620 = vst [vmem:[%s402_s17] sm:$0xff] %v618_v57  ;;  %v617_v60 = vmul.f32 %v615_v56, %v609_v58 }
 0x2f2   : > { %v619_v61 = vadd.f32 %v617_v60, %v613_v59 }
 0x2f4   : > { %621 = vst [vmem:[%s402_s17 + $0x8] sm:$0xff] %v619_v61 }
 0x2f5   : > { %1176 = shalt.err (!%p1173_p1)
}
 0x2f6   : > { %s1177_s27 = scalar_lea.hbm %s1591_s9, 256  ;;  %s1181_s22 = scalar_lea.hbm %s1642_s7, 512 }
 0x2f7   : > { %p1178_p5 = scmp.ne.s32.totalorder %s1591_s9, %s1177_s27  ;;  %p1182_p4 = scmp.lt.u32.totalorder %s1591_s9, %s1642_s7 }
 0x2f8   : > { %p1183_p8 = scmp.lt.u32.totalorder %s1181_s22, %s1177_s27  ;;  %p1185_p3 = scmp.lt.u32.totalorder %s1177_s27, %s1591_s9 }
 0x2f9   : > { %p1179_p11 = pnand %p1178_p5, %p1695_p7 }
 0x2fa   : > { %p1184_p13 = por %p1183_p8, %p1182_p4 }
 0x2fb   : > { %p1180_p12 = pneg %p1179_p11 }
 0x2fc   : > { %p1186_p0 = por %p1185_p3, %p1184_p13 }
 0x2fe   : > { %p1187_p6 = pnand %p1186_p0, %p1180_p12 }
 0x300   : > { %1190 = shalt.err (!%p1187_p6)
}
 0x301   : > { %s1248_s24 = smov 128   ;;  %s1249_s14 = smov 8  }
 0x302   : > { %949 = dma.vmem_to_hbm [thread:$0]  (%p1695_p7), %s1586_s10, 256, %s1591_s9, %s623_s5, %s1248_s24, %s1248_s24, %s1249_s14  }
 0x303 PF: > { %s1696_s23 = sld [smem:[#allocation16_spill]]  ;;  %s1697_s18 = sld [smem:[#allocation20_spill]] }
 0x304   : > { %s1698_s17 = sld [smem:[#allocation17_spill]] }
 0x309   : > { %s651_s16 = sand.u32 1, %s1696_s23   ;;  %p1699_p2 = scmp.ne.s32.totalorder %s1697_s18, 0 }
 0x30a   : > { %p1700_p9 = scmp.ge.s32.totalorder %s1698_s17, 2  ;;  %s652_s19 = scalar_lea.sflag [#allocation4], %s651_s16 }
 0x30c   : > { %p969_p10 = pnand %p1700_p9, %p1699_p2 }
 0x30e   : > { %1220 = dma.done.wait (!%p969_p10), %s652_s19, 256  }
 0x30f   : > { %1222 = vsyncadd (!%p969_p10), %s652_s19, 4294967040  ;;  %s1701_s27 = sld [smem:[#allocation18_spill]]  ;;  %s1702_s20 = sld [smem:[#allocation19_spill]] }
 0x310   : > { %s1703_s24 = smov %s1229_s25  ;;  %s1704_s25 = smov %s1233_s26 }
 0x315   : > { %p24_p1 = scmp.ge.s32.totalorder %s1701_s27, 4   ;;  %s1705_s26 = smov %s1702_s20 }
 0x317   :  { %26 = sbr.rel (!%p24_p1) target bundleno = 11 (0xb), region = 125 }
 0x31e   :  { %657 = vsyncpa [#allocation3], 1 }
 0x31f   :  { %659 = vsyncpa [#allocation3 + $0x1], 1 }
 0x320   :  { %660 = vsyncpa [#allocation6], 1 }
 0x321   :  { %661 = vsyncpa [#allocation9], 1 }
 0x322   :  { %663 = vsyncpa [#allocation9 + $0x1], 1 }
 0x323   :  { %664 = vsyncpa [#allocation4], 1 }
 0x324   :  { %666 = vsyncpa [#allocation4 + $0x1], 1 }

</bundles_post_ra>
